<compile_context>
chip_gen: v5e
topology: v5e:2x2
jax: 0.10.0
libtpu: 0.0.40
codegen_flags: <defaults>
</compile_context>

<pallas_src>
import functools
import math

import jax
import jax.numpy as jnp
from jax.experimental import pallas as pl
from jax.experimental.pallas import tpu as pltpu


def _round_up(x, m):
    return (x + m - 1) // m * m


# ----------------------------- Pallas kernels ---------------------------------

def _proj_stats_kernel(a_ref, w_ref, sum_ref, ssq_ref):
    """Stats-only pass: partial per-channel sum / sumsq of one matmul tile.

    a_ref   : (tile_m, K)   bf16 im2col patches
    w_ref   : (K, Ep)       bf16 conv weight (transposed), constant block
    sum_ref : (8, Ep)       f32 partial per-channel sum    (one block per M tile)
    ssq_ref : (8, Ep)       f32 partial per-channel sumsq  (one block per M tile)
    """
    y = jnp.dot(a_ref[...], w_ref[...], preferred_element_type=jnp.float32)
    tm, ep = y.shape
    # Tile-aligned split of the sublane axis (tm is a multiple of 8) -> partial
    # reduction to 8 rows; padded (all-zero) A rows contribute exactly zero.
    yr = y.reshape(tm // 8, 8, ep)
    sum_ref[...] = jnp.sum(yr, axis=0)
    ssq_ref[...] = jnp.sum(yr * yr, axis=0)


def _proj_bn_kernel(a_ref, w_ref, sum_ref, ssq_ref, gamma_ref, beta_ref, o_ref,
                    *, inv_m, eps):
    """Recompute the conv tile and apply BatchNorm with on-chip finalize.

    a_ref     : (tile_m, K)   bf16 patches
    w_ref     : (K, Ep)       bf16 weight
    sum_ref   : (1, Ep)       f32 global per-channel sum
    ssq_ref   : (1, Ep)       f32 global per-channel sumsq
    gamma_ref : (1, Ep)       f32 BN weight
    beta_ref  : (1, Ep)       f32 BN bias
    o_ref     : (tile_m, Ep)  f32 normalized output
    """
    y = jnp.dot(a_ref[...], w_ref[...], preferred_element_type=jnp.float32)
    mean = sum_ref[...] * inv_m                                  # (1, Ep)
    var = jnp.maximum(ssq_ref[...] * inv_m - mean * mean, 0.0)   # biased (training BN)
    inv = jax.lax.rsqrt(var + eps)                               # EUP, free slot
    scale = gamma_ref[...] * inv
    shift = beta_ref[...] - mean * scale
    o_ref[...] = (y * scale + shift).astype(o_ref.dtype)


# ----------------------------- pallas_call wrappers ----------------------------

def _proj_stats(patches, w_t, *, tile_m, vmem_limit):
    Mp, K = patches.shape
    Ep = w_t.shape[1]
    nm = Mp // tile_m
    return pl.pallas_call(
        _proj_stats_kernel,
        out_shape=(
            jax.ShapeDtypeStruct((nm * 8, Ep), jnp.float32),   # partial sums
            jax.ShapeDtypeStruct((nm * 8, Ep), jnp.float32),   # partial sumsqs
        ),
        grid_spec=pltpu.PrefetchScalarGridSpec(
            num_scalar_prefetch=0,
            grid=(nm,),
            in_specs=[
                pl.BlockSpec((tile_m, K), lambda m: (m, 0)),   # A streams once
                pl.BlockSpec((K, Ep), lambda m: (0, 0)),       # W resident (const index)
            ],
            out_specs=(
                pl.BlockSpec((8, Ep), lambda m: (m, 0)),
                pl.BlockSpec((8, Ep), lambda m: (m, 0)),
            ),
        ),
        compiler_params=pltpu.CompilerParams(
            dimension_semantics=("parallel",),
            vmem_limit_bytes=vmem_limit,
        ),
    )(patches, w_t)


def _proj_bn_apply(patches, w_t, ch_sum, ch_ssq, gamma, beta, *,
                   tile_m, inv_m, eps, vmem_limit):
    Mp, K = patches.shape
    Ep = w_t.shape[1]
    nm = Mp // tile_m
    kernel = functools.partial(_proj_bn_kernel, inv_m=inv_m, eps=eps)
    return pl.pallas_call(
        kernel,
        out_shape=jax.ShapeDtypeStruct((Mp, Ep), jnp.float32),
        grid_spec=pltpu.PrefetchScalarGridSpec(
            num_scalar_prefetch=0,
            grid=(nm,),
            in_specs=[
                pl.BlockSpec((tile_m, K), lambda m: (m, 0)),
                pl.BlockSpec((K, Ep), lambda m: (0, 0)),
                pl.BlockSpec((1, Ep), lambda m: (0, 0)),
                pl.BlockSpec((1, Ep), lambda m: (0, 0)),
                pl.BlockSpec((1, Ep), lambda m: (0, 0)),
                pl.BlockSpec((1, Ep), lambda m: (0, 0)),
            ],
            out_specs=pl.BlockSpec((tile_m, Ep), lambda m: (m, 0)),
        ),
        compiler_params=pltpu.CompilerParams(
            dimension_semantics=("parallel",),
            vmem_limit_bytes=vmem_limit,
        ),
    )(patches, w_t, ch_sum, ch_ssq, gamma, beta)


def _choose_tile_m(M, K, Ep, *, budget_bytes=36 * 1024 * 1024, cap=2048):
    """Pick tile_m so the double-buffered per-step VMEM stays inside `budget`.

    Dominant terms (kernel 2, the heavier of the two passes):
      A tile   : 2 * tile_m * K * 2 B   (bf16, double-buffered)
      out tile : 2 * tile_m * Ep * 4 B  (f32, double-buffered)
      weight   : 2 * K * Ep * 2 B       (bf16, allocated double even if constant)
    Budget keeps worst-case (large-K stages) comfortably under v7x's 64 MiB
    physical VMEM while letting v5e/v6e use the same large tiles.
    """
    const = 2 * K * Ep * 2 + 8 * 8 * Ep * 4 + (1 << 20)
    per_row = 2 * K * 2 + 2 * Ep * 4
    tm = (budget_bytes - const) // per_row
    tm = int(max(8, min(cap, tm)))
    tm -= tm % 8
    tm = max(tm, 8)
    if M <= tm:
        tm = max(_round_up(M, 8), 8)
    return tm


# --------------------------------- module -------------------------------------

class OverlapPatchEmbed:
    def __init__(self, img_size=224, patch_size=7, stride=4, in_chans=3,
                 embed_dim=768, eps=1e-5, key=jax.random.PRNGKey(0)):
        self.patch_size = patch_size
        self.stride = stride
        self.in_chans = in_chans
        self.embed_dim = embed_dim
        self.eps = eps

        # torch _init_weights: conv weight ~ N(0, sqrt(2/fan_out)), conv bias = 0,
        # BatchNorm weight = 1, bias = 0.
        fan_out = patch_size * patch_size * embed_dim
        std = math.sqrt(2.0 / fan_out)
        (kw_key,) = jax.random.split(key, 1)
        self.conv_w = (std * jax.random.normal(
            kw_key, (embed_dim, in_chans, patch_size, patch_size))).astype(jnp.float32)
        # Conv bias: a per-channel constant added before training-mode BatchNorm
        # is cancelled exactly by the mean subtraction, so it never enters the
        # compute path.
        self.conv_b = jnp.zeros((embed_dim,), jnp.float32)
        self.bn_gamma = jnp.ones((embed_dim,), jnp.float32)
        self.bn_beta = jnp.zeros((embed_dim,), jnp.float32)

    def __call__(self, x):
        """x: (N, C, H, W) float32 -> ((N, Ho*Wo, E) float32, Ho, Wo)."""
        N, C, H, W = x.shape
        k = self.patch_size
        s = self.stride
        pad = k // 2
        E = self.embed_dim
        Ho = (H + 2 * pad - k) // s + 1
        Wo = (W + 2 * pad - k) // s + 1
        M = N * Ho * Wo
        K = C * k * k

        # ---- im2col (JAX glue), emitted directly in NHWC layout so the (M, K)
        #      view is a relayout-free reshape; bf16 halves HBM traffic.  Feature
        #      ordering is (c, kh, kw), matching conv_w.reshape(E, K). ----
        xb = x.astype(jnp.bfloat16)
        p = jax.lax.conv_general_dilated_patches(
            xb, (k, k), (s, s), [(pad, pad), (pad, pad)],
            dimension_numbers=("NCHW", "OIHW", "NHWC"))   # (N, Ho, Wo, C*k*k)
        p = p.reshape(M, K)                               # rows = (n, ho, wo) row-major

        # ---- tiling: E untiled (lane-dense, patches stream once per pass),
        #      K untiled and UNpadded (full-extent minor block dim), M tiled. ----
        Ep = _round_up(E, 128)
        tile_m = _choose_tile_m(M, K, Ep)
        Mp = _round_up(M, tile_m)
        patches = jnp.pad(p, ((0, Mp - M), (0, 0))) if Mp != M else p
        w_t = self.conv_w.reshape(E, K).T.astype(jnp.bfloat16)     # (K, E)
        if Ep != E:
            w_t = jnp.pad(w_t, ((0, 0), (0, Ep - E)))

        vmem_limit = 48 * 1024 * 1024   # tile budget keeps us well below this on all gens

        # ---- kernel 1: stats-only pass (partial per-M-tile sum / sumsq) ----
        p_sum, p_ssq = _proj_stats(patches, w_t, tile_m=tile_m, vmem_limit=vmem_limit)

        # ---- tiny JAX reduce of the partials.  Padded rows are all-zero and the
        #      stats divide by the TRUE M inside kernel 2. ----
        ch_sum = jnp.sum(p_sum, axis=0, keepdims=True)    # (1, Ep)
        ch_ssq = jnp.sum(p_ssq, axis=0, keepdims=True)    # (1, Ep)
        gamma = jnp.pad(self.bn_gamma, (0, Ep - E)).reshape(1, Ep)
        beta = jnp.pad(self.bn_beta, (0, Ep - E)).reshape(1, Ep)

        # ---- kernel 2: recompute matmul + fused BN finalize/apply, single
        #      lane-dense f32 output write ----
        out_full = _proj_bn_apply(
            patches, w_t, ch_sum, ch_ssq, gamma, beta,
            tile_m=tile_m, inv_m=1.0 / M, eps=self.eps, vmem_limit=vmem_limit)

        out = out_full[:M, :E].reshape(N, Ho * Wo, E)   # == torch flatten(2).transpose(1,2)
        return out, Ho, Wo


# ---------------------------------- main ---------------------------------------

if __name__ == "__main__":
    key = jax.random.PRNGKey(0)
    k_x, k_p = jax.random.split(key)

    # Small shapes consistent with the module: batch=2, in_chans=4, 16x16 images,
    # patch_size=7, stride=4, embed_dim=32  ->  conv output spatial 4x4.
    N, C, H, W = 2, 4, 16, 16
    E = 32
    x = jax.random.normal(k_x, (N, C, H, W), dtype=jnp.float32)

    mod = OverlapPatchEmbed(img_size=H, patch_size=7, stride=4,
                            in_chans=C, embed_dim=E, key=k_p)

    out, Ho, Wo = mod(x)
    out = jax.block_until_ready(out)

    assert out.shape == (N, Ho * Wo, E), out.shape
    assert Ho == 4 and Wo == 4, (Ho, Wo)
    assert bool(jnp.all(jnp.isfinite(out)))

    # Plain-JAX reference (same bf16-quantized inputs, f32 math) for a sanity check.
    pad_ = mod.patch_size // 2
    xb = x.astype(jnp.bfloat16).astype(jnp.float32)
    wb = mod.conv_w.astype(jnp.bfloat16).astype(jnp.float32)
    y_ref = jax.lax.conv_general_dilated(
        xb, wb, (mod.stride, mod.stride), [(pad_, pad_), (pad_, pad_)],
        dimension_numbers=("NCHW", "OIHW", "NCHW"),
        precision=jax.lax.Precision.HIGHEST)
    mu = y_ref.mean(axis=(0, 2, 3), keepdims=True)
    vr = (y_ref * y_ref).mean(axis=(0, 2, 3), keepdims=True) - mu * mu
    y_ref = (y_ref - mu) * jax.lax.rsqrt(vr + 1e-5)            # gamma=1, beta=0
    ref = y_ref.reshape(N, E, Ho * Wo).transpose(0, 2, 1)
    err = float(jnp.max(jnp.abs(out - ref)))
    assert err < 1e-2, err

    print("KERNEL_OK")
</pallas_src>

<mosaic_0001>
module attributes {stable_mosaic.version = 11 : i64} {
  func.func @_proj_stats_kernel(%arg0: i32, %arg1: memref<32x196xbf16, #tpu.memory_space<vmem>>, %arg2: memref<196x128xbf16, #tpu.memory_space<vmem>>, %arg3: memref<8x128xf32, #tpu.memory_space<vmem>>, %arg4: memref<8x128xf32, #tpu.memory_space<vmem>>) attributes {dimension_semantics = [#tpu.dimension_semantics<parallel>], iteration_bounds = array<i64: 1>, scalar_prefetch = 0 : i64, scratch_operands = 0 : i64, tpu.core_type = #tpu.core_type<tc>, window_params = [{transform_indices = @transform_0, window_bounds = array<i64: 32, 196>}, {pipeline_mode = #tpu.pipeline_mode<synchronous>, transform_indices = @transform_1, window_bounds = array<i64: 196, 128>}, {transform_indices = @transform_2, window_bounds = array<i64: 8, 128>}, {transform_indices = @transform_3, window_bounds = array<i64: 8, 128>}]} {
    %c0 = arith.constant 0 : index
    %c0_0 = arith.constant 0 : index
    %0 = vector.load %arg1[%c0, %c0_0] : memref<32x196xbf16, #tpu.memory_space<vmem>>, vector<32x196xbf16>
    %c0_1 = arith.constant 0 : index
    %c0_2 = arith.constant 0 : index
    %1 = vector.load %arg2[%c0_1, %c0_2] : memref<196x128xbf16, #tpu.memory_space<vmem>>, vector<196x128xbf16>
    %cst = arith.constant dense<0.000000e+00> : vector<32x128xf32>
    %2 = tpu.matmul %0, %1, %cst {dimension_numbers = #tpu.dot_dimension_numbers<[1], [0], [0], [1], [0, 0, 1, 1], [], []>} : vector<32x196xbf16>, vector<196x128xbf16>, vector<32x128xf32> -> vector<32x128xf32>
    %3 = vector.shape_cast %2 : vector<32x128xf32> to vector<4x8x128xf32>
    %cst_3 = arith.constant dense<0.000000e+00> : vector<8x128xf32>
    %4 = vector.multi_reduction <add>, %3, %cst_3 [0] : vector<4x8x128xf32> to vector<8x128xf32>
    %c0_4 = arith.constant 0 : index
    %c0_5 = arith.constant 0 : index
    %5 = vector.load %arg3[%c0_4, %c0_5] : memref<8x128xf32, #tpu.memory_space<vmem>>, vector<8x128xf32>
    tpu.vector_store %arg3[%c0_4, %c0_5], %4 {strides = array<i32>} : memref<8x128xf32, #tpu.memory_space<vmem>>, vector<8x128xf32>,
    %6 = arith.mulf %3, %3 : vector<4x8x128xf32>
    %cst_6 = arith.constant dense<0.000000e+00> : vector<8x128xf32>
    %7 = vector.multi_reduction <add>, %6, %cst_6 [0] : vector<4x8x128xf32> to vector<8x128xf32>
    %c0_7 = arith.constant 0 : index
    %c0_8 = arith.constant 0 : index
    %8 = vector.load %arg4[%c0_7, %c0_8] : memref<8x128xf32, #tpu.memory_space<vmem>>, vector<8x128xf32>
    tpu.vector_store %arg4[%c0_7, %c0_8], %7 {strides = array<i32>} : memref<8x128xf32, #tpu.memory_space<vmem>>, vector<8x128xf32>,
    return
  }
  func.func @transform_0(%arg0: i32) -> (i32, i32) {
    %c0_i32 = arith.constant 0 : i32
    %c0_i32_0 = arith.constant 0 : i32
    return %arg0, %c0_i32 : i32, i32
  }
  func.func @transform_1(%arg0: i32) -> (i32, i32) {
    %c0_i32 = arith.constant 0 : i32
    %c0_i32_0 = arith.constant 0 : i32
    %c0_i32_1 = arith.constant 0 : i32
    return %c0_i32, %c0_i32_0 : i32, i32
  }
  func.func @transform_2(%arg0: i32) -> (i32, i32) {
    %c0_i32 = arith.constant 0 : i32
    %c0_i32_0 = arith.constant 0 : i32
    return %arg0, %c0_i32 : i32, i32
  }
  func.func @transform_3(%arg0: i32) -> (i32, i32) {
    %c0_i32 = arith.constant 0 : i32
    %c0_i32_0 = arith.constant 0 : i32
    return %arg0, %c0_i32 : i32, i32
  }
}

</mosaic_0001>

<bundles_post_ra>
// kernel: tpu_custom_call.1
= control target key start
LH: loop header
LB: loop body
LE: loop exit
PB: predicated region body
PF: predicated region fallthrough
CT: control target
= control target key end

     0   :  { %9 = vsyncpa [#allocation3], 0  ;;  %s512_s0 = inlined_call_operand.hbm [shape: bf16[32,196], index: 0, kind: input, shape index: {}]   ;;  %s513_s1 = inlined_call_operand.hbm [shape: bf16[196,128], index: 1, kind: input, shape index: {}]   ;;  %s514_s2 = inlined_call_operand.hbm [shape: f32[8,128], index: 2, kind: output, shape index: {0}]   ;;  %s515_s3 = inlined_call_operand.hbm [shape: f32[8,128], index: 3, kind: output, shape index: {1}]  }
   0x1   :  { %10 = vsyncpa [#allocation6], 0 }
   0x2   :  { %11 = vsyncpa [#allocation4], 0 }
   0x3   :  { %12 = vsyncpa [#allocation9], 0  ;;  %s17_s14 = sshll.u32 %s512_s0, 4  ;;  %s472_s15 = smov [#allocation2]   ;;  %s18_s14 = int_to_ptr.hbm [resolvable:$true] %s17_s14 }
   0x4   :  { %s19_s16 = sshll.u32 %s472_s15, 4  ;;  %s30_s19 = sshll.u32 %s513_s1, 4  ;;  %s20_s16 = int_to_ptr.vmem [resolvable:$true] %s19_s16  ;;  %s31_s19 = int_to_ptr.hbm [resolvable:$true] %s30_s19 }
   0x5   :  { %s473_s20 = smov 128   ;;  %s474_s21 = smov 8  }
   0x6   :  { %25 = dma.hbm_to_vmem [thread:$0]  %s18_s14, 512, %s20_s16, [#allocation3], %s473_s20, %s473_s20, %s474_s21  }
   0x7   :  { %s475_s22 = smov [#allocation5]   ;;  %s476_s24 = smov 64  }
   0x8   :  { %s32_s23 = sshll.u32 %s475_s22, 4  ;;  %s477_s25 = smov 4   ;;  %s33_s23 = int_to_ptr.vmem [resolvable:$true] %s32_s23 }
   0x9   :  { %38 = dma.hbm_to_vmem [thread:$0]  %s31_s19, 1600, %s33_s23, [#allocation6], %s476_s24, %s476_s24, %s477_s25  }
   0xa   :  { %464 = dma.done.wait [#allocation3], 512  }
   0xb   :  { %465 = vsyncadd [#allocation3], 4294966784 }
   0xc   :  { %466 = dma.done.wait [#allocation6], 1600  }
   0xd   :  { %467 = vsyncadd [#allocation6], 4294965696  ;;  %v342_v0 = vld [vmem:[#allocation5 + $0x38] sm:$0xff]  ;;  %v76_v1 = vld [vmem:[#allocation5 + $0x60] sm:$0x3]  ;;  %vm177_vm0 = vcmask 1041408  }
   0xe   :  { %v144_v2 = vunpack.c.l.b16 %v76_v1  ;;  %181 = vmatpush.bf16.msra.mxu0 %v342_v0  ;;  %347 = vmatpush.bf16.msra.mxu2 %v342_v0  ;;  %v341_v3 = vld [vmem:[#allocation5 + $0x30] sm:$0xff]  ;;  %v340_v6 = vld [vmem:[#allocation5 + $0x28] sm:$0xff]  ;;  %v346_v7 = vld [vmem:[#allocation5 + $0x58] sm:$0xff]  ;;  %vm170_vm1 = vcmask 556032   ;;  %s478_s0 = smov [#allocation7]   ;;  %s238_s28 = sshll.u32 %s514_s2, 4  ;;  %s239_s28 = int_to_ptr.hbm [resolvable:$true] %s238_s28 }
   0xf   :  { %v339_v8 = vld [vmem:[#allocation5 + $0x20] sm:$0xff]  ;;  %v345_v9 = vld [vmem:[#allocation5 + $0x50] sm:$0xff]  ;;  %v338_v10 = vld [vmem:[#allocation5 + $0x18] sm:$0xff]  ;;  %s236_s1 = sshll.u32 %s478_s0, 4  ;;  %s479_s29 = smov [#allocation8]   ;;  %s237_s1 = int_to_ptr.vmem [resolvable:$true] %s236_s1 }
  0x10   :  { %v157_v4 = vpack.c.b16 %v144_v2, %v144_v2  ;;  %v344_v11 = vld [vmem:[#allocation5 + $0x48] sm:$0xff]  ;;  %v337_v12 = vld [vmem:[#allocation5 + $0x10] sm:$0xff]  ;;  %v343_v13 = vld [vmem:[#allocation5 + $0x40] sm:$0xff]  ;;  %s247_s30 = sshll.u32 %s479_s29, 4  ;;  %s249_s6 = sshll.u32 %s515_s3, 4  ;;  %s248_s30 = int_to_ptr.vmem [resolvable:$true] %s247_s30  ;;  %s250_s6 = int_to_ptr.hbm [resolvable:$true] %s249_s6 }
  0x11   :  { %v333_v14 = vld [vmem:[#allocation2 + $0x14] sm:$0xf]  ;;  %v277_v15 = vld [vmem:[#allocation2 + $0x18] sm:$0xf0]  ;;  %v331_v16 = vld [vmem:[#allocation2 + $0x4] sm:$0xf] }
  0x12   :  { %v179_v5 = vsel %vm177_vm0, %v157_v4, 0  ;;  %182 = vmatpush.bf16.msra.mxu0 %v341_v3  ;;  %348 = vmatpush.bf16.msra.mxu2 %v341_v3  ;;  %v269_v17 = vld [vmem:[#allocation2 + $0x8] sm:$0xf0]  ;;  %v280_v18 = vor.u32 %v333_v14, %v277_v15  ;;  %v335_v21 = vld [vmem:[#allocation5] sm:$0xff]  ;;  %v332_v23 = vld [vmem:[#allocation2 + $0x4] sm:$0xf0] }
  0x13   :  { %355 = vmatpush.bf16.msra.mxu3 %v179_v5  ;;  %203 = vmatpush.bf16.msra.mxu1 %v179_v5  ;;  %v336_v19 = vld [vmem:[#allocation5 + $0x8] sm:$0xff]  ;;  %v272_v20 = vor.u32 %v331_v16, %v269_v17  ;;  %v267_v22 = vld [vmem:[#allocation2] sm:$0xf]  ;;  %v275_v24 = vld [vmem:[#allocation2 + $0x10] sm:$0xf] }
  0x14   :  { %v334_v25 = vld [vmem:[#allocation2 + $0x14] sm:$0xf0]  ;;  %v268_v26 = vor.u32 %v332_v23, %v267_v22 }
  0x15   :  { %v276_v27 = vor.u32 %v334_v25, %v275_v24 }
  0x16   :  { %183 = vmatpush.bf16.msra.mxu0 %v340_v6  ;;  %349 = vmatpush.bf16.msra.mxu2 %v340_v6 }
  0x17   :  { %356 = vmatpush.bf16.msra.mxu3 %v346_v7  ;;  %204 = vmatpush.bf16.msra.mxu1 %v346_v7 }
  0x1a   :  { %184 = vmatpush.bf16.msra.mxu0 %v339_v8  ;;  %350 = vmatpush.bf16.msra.mxu2 %v339_v8 }
  0x1b   :  { %357 = vmatpush.bf16.msra.mxu3 %v345_v9  ;;  %205 = vmatpush.bf16.msra.mxu1 %v345_v9 }
  0x1e   :  { %185 = vmatpush.bf16.msra.mxu0 %v338_v10  ;;  %351 = vmatpush.bf16.msra.mxu2 %v338_v10 }
  0x1f   :  { %358 = vmatpush.bf16.msra.mxu3 %v344_v11  ;;  %206 = vmatpush.bf16.msra.mxu1 %v344_v11 }
  0x22   :  { %186 = vmatpush.bf16.msra.mxu0 %v337_v12  ;;  %352 = vmatpush.bf16.msra.mxu2 %v337_v12 }
  0x23   :  { %359 = vmatpush.bf16.msra.mxu3 %v343_v13  ;;  %207 = vmatpush.bf16.msra.mxu1 %v343_v13 }
  0x26   :  { %330 = vmatmul.msk.bf16.vlgmr.msra.gmra.mxu3 %vm170_vm1, %v280_v18  ;;  %187 = vmatpush.bf16.msra.mxu0 %v336_v19 }
  0x27   :  { %353 = vmatpush.bf16.msra.mxu2 %v336_v19  ;;  %329 = vmatmul.msk.bf16.vlgmr.msra.gmra.mxu1 %vm170_vm1, %v272_v20 }
  0x2a   :  { %188 = vmatpush.bf16.msra.mxu0 %v335_v21 }
  0x2b   :  { %354 = vmatpush.bf16.msra.mxu2 %v335_v21 }
  0x2d   :  { %189 = vmatmul.bf16.vlgmr.msra.gmra.mxu0 %v268_v26 }
  0x2e   :  { %194 = vmatmul.bf16.vlgmr.msra.gmra.mxu2 %v276_v27 }
  0xa4   :  { %v209_v28 = vpop.f32.mrf.mxu1 }
  0xa9   :  { %v214_v30 = vpop.f32.mrf.mxu3 }
  0xaa   :  { %v190_v29 = vpop.f32.mrf.mxu0 }
  0xab   :  { %v210_v32 = vadd.f32 %v209_v28, %v190_v29 }
  0xac   :  { %v211_v33 = vpop.f32.mrf.mxu1 }
  0xad   :  { %v223_v37 = vmul.f32 %v210_v32, %v210_v32 }
  0xb1   :  { %v195_v31 = vpop.f32.mrf.mxu2  ;;  %v216_v41 = vpop.f32.mrf.mxu3 }
  0xb2   :  { %v192_v34 = vpop.f32.mrf.mxu0  ;;  %v215_v38 = vadd.f32 %v214_v30, %v195_v31 }
  0xb3   :  { %v212_v35 = vadd.f32 %v211_v33, %v192_v34 }
  0xb4   :  { %v225_v43 = vmul.f32 %v215_v38, %v215_v38 }
  0xb5   :  { %v224_v36 = vmul.f32 %v212_v35, %v212_v35  ;;  %v219_v39 = vadd.f32 %v212_v35, %v210_v32 }
  0xb7   :  { %v227_v40 = vadd.f32 %v224_v36, %v223_v37  ;;  %v220_v45 = vadd.f32 %v219_v39, %v215_v38 }
  0xb9   :  { %v197_v42 = vpop.f32.mrf.mxu2  ;;  %v228_v48 = vadd.f32 %v227_v40, %v225_v43 }
  0xba   :  { %v217_v44 = vadd.f32 %v216_v41, %v197_v42 }
  0xbc   :  { %v221_v46 = vadd.f32 %v220_v45, %v217_v44  ;;  %v226_v47 = vmul.f32 %v217_v44, %v217_v44 }
  0xbe   :  { %v229_v49 = vadd.f32 %v228_v48, %v226_v47  ;;  %222 = vst [vmem:[#allocation7] sm:$0xff] %v221_v46 }
  0xbf   :  { %241 = dma.vmem_to_hbm [thread:$0]  %s237_s1, 128, %s239_s28, [#allocation4]  }
  0xc0   :  { %230 = vst [vmem:[#allocation8] sm:$0xff] %v229_v49 }
  0xc1   :  { %252 = dma.vmem_to_hbm [thread:$0]  %s248_s30, 128, %s250_s6, [#allocation9]  }
  0xc2   :  { %468 = dma.done.wait [#allocation4], 128  }
  0xc3   :  { %469 = vsyncadd [#allocation4], 4294967168 }
  0xc4   :  { %470 = dma.done.wait [#allocation9], 128  }
  0xc5   :  { %471 = vsyncadd [#allocation9], 4294967168 }
  0xc6   :  { %261 = vsyncpa [#allocation3], 1 }
  0xc7   :  { %262 = vsyncpa [#allocation6], 1 }
  0xc8   :  { %263 = vsyncpa [#allocation4], 1 }
  0xc9   :  { %264 = vsyncpa [#allocation9], 1 }

</bundles_post_ra>
